<compile_context>
chip_gen: v6e
topology: v6e:2x2x1
jax: 0.10.0
libtpu: 0.0.40
codegen_flags: <defaults>
</compile_context>

<pallas_src>
import numpy as np

import jax
import jax.numpy as jnp
from jax.experimental import pallas as pl
from jax.experimental.pallas import tpu as pltpu  # noqa: F401  (TPU backend)

BLOCK_SIZE = 4   # max sequence length (causal-mask buffer size in the module)
N_EMBD = 32
HEAD_SIZE = 16
DROPOUT = 0.0    # identity at p=0.0


def head_kernel(x_ref, w_ref, bias_ref, o_ref):
    # x_ref: (B*T, C) flattened batch; w_ref: (C, 3H) fused [q*scale | k | v]
    # weight; bias_ref: (B*T, B*T) additive 0/-inf block-diagonal causal mask;
    # o_ref: (B*T, H).
    x = x_ref[...]            # (BT, C) f32
    w = w_ref[...]            # (C, 3H) f32
    h = o_ref.shape[-1]

    # Single fused QKV projection: one MXU matmul instead of three.
    # Q columns are pre-scaled by C**-0.5 at init time.
    qkv = jnp.dot(x, w, preferred_element_type=jnp.float32)       # (BT, 3H)
    q = qkv[:, 0 * h:1 * h]                                       # (BT, H), lane offset 0
    k = qkv[:, 1 * h:2 * h]                                       # (BT, H)
    v = qkv[:, 2 * h:3 * h]                                       # (BT, H)

    # Scores for the whole batch at once: contract the last dims of q and k
    # directly (no materialized k.T -> no XLU transpose).  The scale is already
    # baked into q; cross-batch / future positions are removed by the additive
    # -inf bias (diagonal bias is 0, so every softmax row stays finite).
    wei = jax.lax.dot_general(q, k, (((1,), (1,)), ((), ())),
                              preferred_element_type=jnp.float32)  # (BT, BT)
    wei = wei + bias_ref[...]

    # Numerically-stable softmax along the last axis.
    m = jnp.max(wei, axis=-1, keepdims=True)
    e = jnp.exp(wei - m)
    s = jnp.sum(e, axis=-1, keepdims=True)
    p = e * pl.reciprocal(s, approx=False)   # divide off the VALU, exact

    # dropout(p=0.0) is the identity -> nothing to do.

    out = jnp.dot(p, v, preferred_element_type=jnp.float32)        # (BT, H)
    o_ref[...] = out.astype(o_ref.dtype)


def make_head_params(wk_t, wq_t, wv_t, n_embd=N_EMBD):
    """One-time (parameter-load-time) fusion of the three Linear weights.

    Returns the fused (C, 3H) weight in [q*scale | k | v] order with the
    C**-0.5 attention scale folded into the Q columns.
    """
    scale = jnp.asarray(float(n_embd) ** -0.5, dtype=wq_t.dtype)
    return jnp.concatenate([wq_t * scale, wk_t, wv_t], axis=1)


def make_mask_bias(batch, seq_len, dtype=np.float32):
    """Compile-time block-diagonal causal mask as an additive 0/-inf bias."""
    bt = batch * seq_len
    row = np.arange(bt)[:, None]
    col = np.arange(bt)[None, :]
    keep = ((row // seq_len) == (col // seq_len)) & \
           ((col % seq_len) <= (row % seq_len))
    return jnp.asarray(np.where(keep, 0.0, -np.inf).astype(dtype))


@jax.jit
def head_forward(x, w_qkv, mask_bias):
    """x: (B, T, C); w_qkv: (C, 3H) fused weight; mask_bias: (B*T, B*T)."""
    B, T, C = x.shape
    H = w_qkv.shape[1] // 3

    # Flatten the batch so the kernel sees one (B*T, C) slab — a single
    # gridless invocation, whole arrays resident in VMEM.  reshape is a free
    # bitcast.
    x2 = x.reshape(B * T, C)

    out2 = pl.pallas_call(
        head_kernel,
        out_shape=jax.ShapeDtypeStruct((B * T, H), x.dtype),
    )(x2, w_qkv, mask_bias)
    return out2.reshape(B, T, H)


def reference_head(x, wk_t, wq_t, wv_t):
    """Pure-JAX reference replicating the PyTorch forward exactly."""
    B, T, C = x.shape
    k = x @ wk_t
    q = x @ wq_t
    v = x @ wv_t
    wei = jnp.einsum("bth,bsh->bts", q, k) * (C ** -0.5)
    tril = jnp.tril(jnp.ones((T, T), dtype=bool))
    wei = jnp.where(tril, wei, -jnp.inf)
    wei = jax.nn.softmax(wei, axis=-1)
    return jnp.einsum("bts,bsh->bth", wei, v)


if __name__ == "__main__":
    key = jax.random.PRNGKey(0)
    k_x, k_wk, k_wq, k_wv = jax.random.split(key, 4)

    B, T, C, H = 2, BLOCK_SIZE, N_EMBD, HEAD_SIZE

    x = jax.random.normal(k_x, (B, T, C), dtype=jnp.float32)

    # Deterministic parameter init mimicking nn.Linear (uniform in +-1/sqrt(C)),
    # stored directly in transposed (C, H) layout.
    bound = 1.0 / (C ** 0.5)
    wk_t = jax.random.uniform(k_wk, (C, H), jnp.float32, -bound, bound)
    wq_t = jax.random.uniform(k_wq, (C, H), jnp.float32, -bound, bound)
    wv_t = jax.random.uniform(k_wv, (C, H), jnp.float32, -bound, bound)

    # One-time parameter / constant preparation (outside the per-call path).
    w_qkv = make_head_params(wk_t, wq_t, wv_t, n_embd=C)     # (C, 3H)
    mask_bias = make_mask_bias(B, T)                          # (B*T, B*T)

    out = head_forward(x, w_qkv, mask_bias)
    out = jax.block_until_ready(out)

    ref = reference_head(x, wk_t, wq_t, wv_t)
    assert out.shape == (B, T, H)
    assert jnp.allclose(out, ref, atol=1e-5, rtol=1e-5), "mismatch vs reference"

    print("KERNEL_OK")
</pallas_src>

<mosaic_0001>
module attributes {stable_mosaic.version = 11 : i64} {
  func.func @head_kernel(%arg0: memref<8x32xf32, #tpu.memory_space<vmem>>, %arg1: memref<32x48xf32, #tpu.memory_space<vmem>>, %arg2: memref<8x8xf32, #tpu.memory_space<vmem>>, %arg3: memref<8x16xf32, #tpu.memory_space<vmem>>) attributes {dimension_semantics = [], scalar_prefetch = 0 : i64, scratch_operands = 0 : i64, tpu.core_type = #tpu.core_type<tc>} {
    %c0 = arith.constant 0 : index
    %c0_0 = arith.constant 0 : index
    %0 = vector.load %arg0[%c0, %c0_0] : memref<8x32xf32, #tpu.memory_space<vmem>>, vector<8x32xf32>
    %c0_1 = arith.constant 0 : index
    %c0_2 = arith.constant 0 : index
    %1 = vector.load %arg1[%c0_1, %c0_2] : memref<32x48xf32, #tpu.memory_space<vmem>>, vector<32x48xf32>
    %cst = arith.constant dense<0.000000e+00> : vector<8x48xf32>
    %2 = tpu.matmul %0, %1, %cst {dimension_numbers = #tpu.dot_dimension_numbers<[1], [0], [0], [1], [0, 0, 1, 1], [], []>} : vector<8x32xf32>, vector<32x48xf32>, vector<8x48xf32> -> vector<8x48xf32>
    %3 = vector.extract_strided_slice %2 {offsets = [0, 0], sizes = [8, 16], strides = [1, 1]} : vector<8x48xf32> to vector<8x16xf32>
    %4 = vector.extract_strided_slice %2 {offsets = [0, 16], sizes = [8, 16], strides = [1, 1]} : vector<8x48xf32> to vector<8x16xf32>
    %5 = vector.extract_strided_slice %2 {offsets = [0, 32], sizes = [8, 16], strides = [1, 1]} : vector<8x48xf32> to vector<8x16xf32>
    %cst_3 = arith.constant dense<0.000000e+00> : vector<8x8xf32>
    %6 = tpu.matmul %3, %4, %cst_3 {dimension_numbers = #tpu.dot_dimension_numbers<[1], [1], [0], [0], [0, 0, 1, 0], [], []>} : vector<8x16xf32>, vector<8x16xf32>, vector<8x8xf32> -> vector<8x8xf32>
    %c0_4 = arith.constant 0 : index
    %c0_5 = arith.constant 0 : index
    %7 = vector.load %arg2[%c0_4, %c0_5] : memref<8x8xf32, #tpu.memory_space<vmem>>, vector<8x8xf32>
    %8 = arith.addf %6, %7 : vector<8x8xf32>
    %cst_6 = arith.constant dense<0xFF800000> : vector<8xf32>
    %9 = vector.multi_reduction <maximumf>, %8, %cst_6 [1] : vector<8x8xf32> to vector<8xf32>
    %10 = vector.shape_cast %9 : vector<8xf32> to vector<8x1xf32>
    %11 = vector.broadcast %10 : vector<8x1xf32> to vector<8x8xf32>
    %12 = arith.subf %8, %11 : vector<8x8xf32>
    %13 = math.exp %12 : vector<8x8xf32>
    %cst_7 = arith.constant dense<0.000000e+00> : vector<8xf32>
    %14 = vector.multi_reduction <add>, %13, %cst_7 [1] : vector<8x8xf32> to vector<8xf32>
    %15 = vector.shape_cast %14 : vector<8xf32> to vector<8x1xf32>
    %16 = tpu.reciprocal %15 : vector<8x1xf32> -> vector<8x1xf32>
    %17 = vector.broadcast %16 : vector<8x1xf32> to vector<8x8xf32>
    %18 = arith.mulf %13, %17 : vector<8x8xf32>
    %cst_8 = arith.constant dense<0.000000e+00> : vector<8x16xf32>
    %19 = tpu.matmul %18, %5, %cst_8 {dimension_numbers = #tpu.dot_dimension_numbers<[1], [0], [0], [1], [0, 0, 1, 1], [], []>} : vector<8x8xf32>, vector<8x16xf32>, vector<8x16xf32> -> vector<8x16xf32>
    %c0_9 = arith.constant 0 : index
    %c0_10 = arith.constant 0 : index
    %20 = vector.load %arg3[%c0_9, %c0_10] : memref<8x16xf32, #tpu.memory_space<vmem>>, vector<8x16xf32>
    tpu.vector_store %arg3[%c0_9, %c0_10], %19 {strides = array<i32>} : memref<8x16xf32, #tpu.memory_space<vmem>>, vector<8x16xf32>,
    return
  }
}

</mosaic_0001>

<bundles_post_ra>
// kernel: head_forward.1
= control target key start
LH: loop header
LB: loop body
LE: loop exit
PB: predicated region body
PF: predicated region fallthrough
CT: control target
= control target key end

     0   :  { %8 = vsyncpa [#allocation3], 0  ;;  %s500_s0 = inlined_call_operand.hbm [shape: f32[8,32], index: 0, kind: input, shape index: {}]   ;;  %s501_s1 = inlined_call_operand.hbm [shape: f32[32,48], index: 1, kind: input, shape index: {}]   ;;  %s502_s2 = inlined_call_operand.hbm [shape: f32[8,8], index: 2, kind: input, shape index: {}]   ;;  %s503_s3 = inlined_call_operand.hbm [shape: f32[8,16], index: 3, kind: output, shape index: {}]  }
   0x1   :  { %9 = vsyncpa [#allocation6], 0 }
   0x2   :  { %10 = vsyncpa [#allocation4], 0  ;;  %s449_s12 = smov [#allocation5]  }
   0x3   :  { %s26_s13 = sshll.u32 %s449_s12, 4  ;;  %s27_s13 = int_to_ptr.vmem [resolvable:$true] %s26_s13 }
   0x4   :  { %s371_s14 = scalar_lea.vmem %s27_s13, 512  ;;  %p376_p1 = scmp.lt.s32.totalorder %s27_s13, %s27_s13 }
   0x5   :  { %p372_p0 = scmp.ne.s32.totalorder %s27_s13, %s371_s14  ;;  %p377_p2 = scmp.lt.s32.totalorder %s371_s14, %s371_s14 }
   0x7   :  { %p378_p3 = por %p377_p2, %p376_p1 }
   0x9   :  { %p379_p4 = pnand %p378_p3, %p372_p0 }
   0xb   :  { %382 = shalt.err (!%p379_p4)
}
   0xc   :  { %s450_s15 = smov 128   ;;  %s451_s16 = smov 8  }
   0xd   :  { %32 = dma.hbm_to_vmem [thread:$0]  %s501_s1, 512, %s27_s13, [#allocation6], %s450_s15, %s450_s15, %s451_s16  }
   0xe   :  { %s452_s19 = smov [#allocation2]   ;;  %s453_s21 = smov [#allocation7]  }
   0xf   :  { %s17_s20 = sshll.u32 %s452_s19, 4  ;;  %s39_s22 = sshll.u32 %s453_s21, 4  ;;  %s18_s20 = int_to_ptr.vmem [resolvable:$true] %s17_s20  ;;  %s40_s22 = int_to_ptr.vmem [resolvable:$true] %s39_s22 }
  0x10   :  { %s391_s23 = scalar_lea.vmem %s18_s20, 128  ;;  %p396_p6 = scmp.lt.s32.totalorder %s18_s20, %s18_s20 }
  0x11   :  { %p392_p5 = scmp.ne.s32.totalorder %s18_s20, %s391_s23  ;;  %p397_p7 = scmp.lt.s32.totalorder %s391_s23, %s391_s23 }
  0x13   :  { %p398_p8 = por %p397_p7, %p396_p6 }
  0x15   :  { %p399_p9 = pnand %p398_p8, %p392_p5 }
  0x17   :  { %402 = shalt.err (!%p399_p9)
}
  0x18   :  { %20 = dma.hbm_to_vmem [thread:$0]  %s500_s0, 128, %s18_s20, [#allocation3]  }
  0x19   :  { %s411_s26 = scalar_lea.vmem %s40_s22, 128  ;;  %p416_p11 = scmp.lt.s32.totalorder %s40_s22, %s40_s22 }
  0x1a   :  { %p412_p10 = scmp.ne.s32.totalorder %s40_s22, %s411_s26  ;;  %p417_p12 = scmp.lt.s32.totalorder %s411_s26, %s411_s26 }
  0x1c   :  { %p418_p13 = por %p417_p12, %p416_p11 }
  0x1e   :  { %p419_p0 = pnand %p418_p13, %p412_p10 }
  0x20   :  { %422 = shalt.err (!%p419_p0)
}
  0x21   :  { %42 = dma.hbm_to_vmem [thread:$0]  %s502_s2, 128, %s40_s22, [#allocation6]  }
  0x22   :  { %443 = dma.done.wait [#allocation3], 128  }
  0x23   :  { %444 = vsyncadd [#allocation3], 4294967168 }
  0x24   :  { %445 = dma.done.wait [#allocation6], 640  }
  0x25   :  { %446 = vsyncadd [#allocation6], 4294966656  ;;  %v454_v0 = vmov 0.0   ;;  %vm455_vm0 = vmmov 0   ;;  %v56_v1 = vld [vmem:[#allocation5 + $0x18] sm:$0xff]  ;;  %v55_v2 = vld [vmem:[#allocation5 + $0x10] sm:$0xff] }
  0x26   :  { %328 = vmatprep.subr.mxu0 %v454_v0  ;;  %336 = vmatprep.mubr.msk.f32.mxu0 %vm455_vm0, %v454_v0  ;;  %v54_v3 = vld [vmem:[#allocation5 + $0x8] sm:$0xff]  ;;  %v53_v4 = vld [vmem:[#allocation5] sm:$0xff]  ;;  %v52_v5 = vld [vmem:[#allocation2] sm:$0xff]  ;;  %vm57_vm1 = vcmask 261120   ;;  %s456_s0 = smov 112   ;;  %vm135_vm2 = vcmask 130048  }
  0x27   :  { %339 = vmatprep.subr.mxu1 %v454_v0  ;;  %341 = vmatprep.mubr.msk.f32.mxu1 %vm455_vm0, %v454_v0  ;;  %v131_v9 = vld [vmem:[#allocation7] sm:$0xff]  ;;  %vm210_vm3 = vcmask 64512   ;;  %s457_s2 = smov 96   ;;  %s458_s28 = smov [#allocation8]  }
  0x28   :  { %329 = vmatpush3.msra.mxu0 %v56_v1  ;;  %s305_s29 = sshll.u32 %s458_s28, 4  ;;  %s306_s29 = int_to_ptr.vmem [resolvable:$true] %s305_s29 }
  0x29   :  { %330 = vmatprep.subr.mxu0 %v454_v0  ;;  %s423_s30 = scalar_lea.vmem %s306_s29, 128  ;;  %p428_p2 = scmp.lt.s32.totalorder %s306_s29, %s306_s29 }
  0x2a   :  { %331 = vmatpush3.msra.mxu0 %v55_v2  ;;  %p424_p1 = scmp.ne.s32.totalorder %s306_s29, %s423_s30  ;;  %p429_p3 = scmp.lt.s32.totalorder %s423_s30, %s423_s30 }
  0x2b   :  { %332 = vmatprep.subr.mxu0 %v454_v0 }
  0x2c   :  { %333 = vmatpush3.msra.mxu0 %v54_v3  ;;  %p430_p4 = por %p429_p3, %p428_p2 }
  0x2d   :  { %334 = vmatprep.subr.mxu0 %v454_v0 }
  0x2e   :  { %335 = vmatpush3.msra.mxu0 %v53_v4  ;;  %p431_p5 = pnand %p430_p4, %p424_p1 }
  0x2f   :  { %337 = vmatmul.mubr.msk.f32.vlgmr.msra.gmra.mxu0 %vm57_vm1, %v52_v5 }
  0xef   :  { %v127_v6 = vpop.f32.mrf.mxu0 }
  0xf0   :  { %133 = vrot.lane.b32.xlu0 %v127_v6, %s456_s0 }
  0xf1   :  { %v338_v7 = vpop.f32.mrf.mxu0 }
 0x162   :  { %v134_v8 = vpop.permute.xlu0 %133 }
 0x163   :  { %340 = vmatpush3.xpose.msk.msra.mxu1 %vm135_vm2, %v134_v8 }
 0x164   :  { %344 = vmatprep.subr.mxu1 %v454_v0 }
 0x166   :  { %342 = vmatmul.mubr.msk.f32.vlgmr.msra.gmra.mxu1 %vm135_vm2, %v127_v6 }
 0x167   :  { %346 = vmatprep.mubr.msk.f32.mxu1 %vm455_vm0, %v454_v0 }
 0x226   :  { %v206_v10 = vpop.f32.mrf.mxu1 }
 0x227   :  { %v207_v11 = vadd.f32 %v206_v10, %v131_v9 }
 0x228   :  { %v343_v12 = vpop.f32.mrf.mxu1 }
 0x229   :  { %v211_v13 = vsel %vm210_vm3, %v207_v11, -inf }
 0x22a   :  { %212 = vmax.xlane.f32.xlu0 %v211_v13 }
 0x2b3   :  { %v213_v14 = vpop.xlane.xlu0 %212 }
 0x2b4   :  { %v214_v15 = vsub.f32 %v207_v11, %v213_v14 }
 0x2b6   :  { %v215_v16 = vmul.f32 1.442695, %v214_v15 }
 0x2b8   :  { %359 = vpow2.f32 %v215_v16 }
 0x2c5   :  { %v360_v17 = vpop.eup %359 }
 0x2c6   :  { %v217_v18 = vsel %vm210_vm3, %v360_v17, 0.0 }
 0x2c7   :  { %218 = vadd.xlane.f32.xlu1 %v217_v18 }
 0x2d8   :  { %222 = vrot.lane.b32.xlu1 %v127_v6, %s457_s2 }
 0x350   :  { %v219_v19 = vpop.xlane.xlu1 %218 }
 0x351   :  { %361 = vrcp.f32 %v219_v19 }
 0x354   :  { %v223_v20 = vpop.permute.xlu1 %222 }
 0x355   :  { %345 = vmatpush3.msra.mxu1 %v223_v20 }
 0x35e   :  { %v362_v21 = vpop.eup %361 }
 0x35f   :  { %v221_v22 = vmul.f32 %v362_v21, %v360_v17 }
 0x361   :  { %347 = vmatmul.mubr.msk.f32.vlgmr.msra.gmra.mxu1 %vm210_vm3, %v221_v22 }
 0x421   :  { %v294_v23 = vpop.f32.mrf.mxu1 }
 0x422   :  { %298 = vst.msk [vmem:[#allocation8] sm:$0xff] %vm135_vm2, %v294_v23 }
 0x423   :  { %v348_v24 = vpop.f32.mrf.mxu1 }
 0x424   :  { %434 = shalt.err (!%p431_p5)
}
 0x425   :  { %308 = dma.vmem_to_hbm [thread:$0]  %s306_s29, 128, %s503_s3, [#allocation4]  }
 0x426   :  { %447 = dma.done.wait [#allocation4], 128  }
 0x427   :  { %448 = vsyncadd [#allocation4], 4294967168 }
 0x428   :  { %312 = vsyncpa [#allocation3], 1 }
 0x429   :  { %313 = vsyncpa [#allocation6], 1 }
 0x42a   :  { %314 = vsyncpa [#allocation4], 1 }

</bundles_post_ra>
